<compile_context>
chip_gen: v7x
topology: tpu7x:2x2x1
jax: 0.10.0
libtpu: 0.0.40
codegen_flags: <defaults>
</compile_context>

<pallas_src>
import functools

import jax
import jax.numpy as jnp
from jax.experimental import pallas as pl
from jax.experimental.pallas import tpu as pltpu

_LANE = 128    # TPU lane width (last-dim tiling unit)
_SUBLANE = 8   # f32 sublane tiling unit


def _round_up(n: int, m: int) -> int:
    return (n + m - 1) // m * m


def _preemphasis_kernel(x_ref, o_ref, carry_ref, *, coef: float):
    j = pl.program_id(1)                          # time-tile index (innermost)

    x = x_ref[...].astype(jnp.float32)            # (BM, TN)
    # prev[:, t] = x[:, t-1] for t >= 1; lane 0 wraps and is blended below.
    prev = pltpu.roll(x, shift=1, axis=1)         # XLU lane rotate (cheap)

    # Column-0 value of `prev`:
    #   j == 0 : reflect padding          -> x[:, 1]
    #   j  > 0 : last sample of tile j-1  -> VMEM carry's last lane
    cw = carry_ref.shape[1]
    carry_last = carry_ref[:, cw - 1:cw]                      # (BM, 1) f32
    prev0 = jnp.where(j == 0, x[:, 1:2], carry_last)          # (BM, 1)
    col = jax.lax.broadcasted_iota(jnp.int32, x.shape, 1)
    prev = jnp.where(col == 0, prev0, prev)

    # Single full-tile, lane-dense store (no narrow fixup store).
    o_ref[...] = (x - coef * prev).astype(o_ref.dtype)

    # Carry this tile's trailing samples for time tile j+1 (same batch tile;
    # the next batch tile restarts at j == 0 and ignores the stale carry).
    carry_ref[...] = x[:, -cw:]


def pre_emphasis(x: jax.Array, coef: float = 0.97, *,
                 bm: int = 256, tn: int = 4096, donate: bool = False) -> jax.Array:
    """Pallas TPU implementation of PreEmphasis.forward for a 2-D (B, T) signal."""
    assert x.ndim == 2, "The number of dimensions of input tensor must be 2!"
    assert bm % _SUBLANE == 0 and tn % _LANE == 0 and tn >= _LANE
    B, T = x.shape
    assert T >= 2, "reflect padding needs at least 2 time samples"

    # Only signals shorter than one lane tile take a (tiny) pad; everything
    # else runs unpadded with Pallas-masked ragged last blocks.
    if T < _LANE:
        xp, Tp = jnp.pad(x, ((0, 0), (0, _LANE - T))), _LANE
    else:
        xp, Tp = x, T

    TN = min(tn, _round_up(Tp, _LANE))
    if B < _SUBLANE:
        BM = B                                    # block dim == full array dim
    else:
        BM = min(bm, _round_up(B, _SUBLANE))
        if pl.cdiv(B, BM) < 2:                    # give v7x's 2nd core work
            BM = _round_up(pl.cdiv(B, 2), _SUBLANE)

    grid = (pl.cdiv(B, BM), pl.cdiv(Tp, TN))
    itemsize = jnp.dtype(x.dtype).itemsize
    block_bytes = BM * TN * itemsize
    # 2x double-buffered in + 2x out + carry + slack; >= 32 MiB so the 4 MiB
    # default block also fits on v5e (16 MiB scoped default otherwise) while
    # staying well under v7x's 64 MiB physical VMEM.
    vmem_limit = int(max(32 << 20, 4 * block_bytes + (4 << 20)))

    kernel = functools.partial(_preemphasis_kernel, coef=float(coef))
    out = pl.pallas_call(
        kernel,
        out_shape=jax.ShapeDtypeStruct((B, Tp), x.dtype),
        grid=grid,
        in_specs=[pl.BlockSpec((BM, TN), lambda i, j: (i, j))],
        out_specs=pl.BlockSpec((BM, TN), lambda i, j: (i, j)),
        scratch_shapes=[pltpu.VMEM((BM, min(_LANE, TN)), jnp.float32)],
        compiler_params=pltpu.CompilerParams(
            dimension_semantics=("parallel", "arbitrary"),
            vmem_limit_bytes=vmem_limit),
        cost_estimate=pl.CostEstimate(
            flops=2 * B * T, transcendentals=0,
            bytes_accessed=2 * B * T * itemsize),
        input_output_aliases=({0: 0} if donate else {}),
    )(xp)

    return out if Tp == T else out[:, :T]


def _reference(x: jax.Array, coef: float = 0.97) -> jax.Array:
    # Plain-JAX reference of the PyTorch forward (reflect pad + conv1d).
    prev = jnp.concatenate([x[:, 1:2], x[:, :-1]], axis=1)
    return x - coef * prev


if __name__ == "__main__":
    key = jax.random.PRNGKey(0)
    coef = 0.97
    k1, k2 = jax.random.split(key)

    # Small sanity shape matching the module's 2-D (batch, time) contract.
    x_small = jax.random.normal(k1, (2, 16), dtype=jnp.float32)
    out_small = jax.block_until_ready(pre_emphasis(x_small, coef))
    assert out_small.shape == x_small.shape and out_small.dtype == x_small.dtype
    assert jnp.allclose(out_small, _reference(x_small, coef), atol=1e-6, rtol=1e-6)

    # Exercises multiple batch/time tiles, the cross-tile VMEM carry, the
    # ragged (un-padded) last blocks, and the batch split:
    # grid = (2, 4) with bm=8, tn=256 on a (10, 1000) signal.
    x_big = jax.random.normal(k2, (10, 1000), dtype=jnp.float32)
    ref_big = _reference(x_big, coef)
    out_big = jax.block_until_ready(pre_emphasis(x_big, coef, bm=8, tn=256))
    assert out_big.shape == x_big.shape
    assert jnp.allclose(out_big, ref_big, atol=1e-6, rtol=1e-6)

    # In-place (aliased output) variant.
    out_alias = jax.block_until_ready(
        pre_emphasis(x_big, coef, bm=8, tn=256, donate=True))
    assert jnp.allclose(out_alias, ref_big, atol=1e-6, rtol=1e-6)

    print("KERNEL_OK")
</pallas_src>

<mosaic_0001>
module attributes {stable_mosaic.version = 11 : i64} {
  func.func @_preemphasis_kernel(%arg0: i32, %arg1: i32, %arg2: memref<2x128xf32, #tpu.memory_space<vmem>>, %arg3: memref<2x128xf32, #tpu.memory_space<vmem>>, %arg4: memref<2x128xf32, #tpu.memory_space<vmem>>) attributes {dimension_semantics = [#tpu.dimension_semantics<parallel>, #tpu.dimension_semantics<arbitrary>], iteration_bounds = array<i64: 1, 1>, scalar_prefetch = 0 : i64, scratch_operands = 1 : i64, tpu.core_type = #tpu.core_type<tc>, window_params = [{transform_indices = @transform_0, window_bounds = array<i64: 2, 128>}, {transform_indices = @transform_1, window_bounds = array<i64: 2, 128>}]} {
    %c0 = arith.constant 0 : index
    %c0_0 = arith.constant 0 : index
    %0 = vector.load %arg2[%c0, %c0_0] : memref<2x128xf32, #tpu.memory_space<vmem>>, vector<2x128xf32>
    %c1_i32 = arith.constant 1 : i32
    %1 = tpu.dynamic_rotate %0 by %c1_i32 dim 1 : vector<2x128xf32>, i32 -> vector<2x128xf32>
    %c0_1 = arith.constant 0 : index
    %c127 = arith.constant 127 : index
    %2 = vector.load %arg4[%c0_1, %c127] : memref<2x128xf32, #tpu.memory_space<vmem>>, vector<2x1xf32>
    %c0_i32 = arith.constant 0 : i32
    %3 = arith.cmpi eq, %arg1, %c0_i32 : i32
    %4 = vector.extract_strided_slice %0 {offsets = [0, 1], sizes = [2, 1], strides = [1, 1]} : vector<2x128xf32> to vector<2x1xf32>
    %5 = arith.select %3, %4, %2 : vector<2x1xf32>
    %6 = tpu.iota {dimensions = array<i32: 1>} : vector<2x128xi32>
    %c0_i32_2 = arith.constant 0 : i32
    %7 = vector.broadcast %c0_i32_2 : i32 to vector<2x128xi32>
    %8 = arith.cmpi eq, %6, %7 : vector<2x128xi32>
    %9 = vector.shape_cast %5 : vector<2x1xf32> to vector<2x1xf32>
    %10 = vector.broadcast %9 : vector<2x1xf32> to vector<2x128xf32>
    %11 = arith.select %8, %10, %1 : vector<2x128xi1>, vector<2x128xf32>
    %cst = arith.constant 9.700000e-01 : f32
    %12 = vector.broadcast %cst : f32 to vector<2x128xf32>
    %13 = arith.mulf %12, %11 : vector<2x128xf32>
    %14 = arith.subf %0, %13 : vector<2x128xf32>
    %c0_3 = arith.constant 0 : index
    %c0_4 = arith.constant 0 : index
    %15 = vector.load %arg3[%c0_3, %c0_4] : memref<2x128xf32, #tpu.memory_space<vmem>>, vector<2x128xf32>
    tpu.vector_store %arg3[%c0_3, %c0_4], %14 {strides = array<i32>} : memref<2x128xf32, #tpu.memory_space<vmem>>, vector<2x128xf32>,
    %c0_5 = arith.constant 0 : index
    %c0_6 = arith.constant 0 : index
    %16 = vector.load %arg4[%c0_5, %c0_6] : memref<2x128xf32, #tpu.memory_space<vmem>>, vector<2x128xf32>
    tpu.vector_store %arg4[%c0_5, %c0_6], %0 {strides = array<i32>} : memref<2x128xf32, #tpu.memory_space<vmem>>, vector<2x128xf32>,
    return
  }
  func.func @transform_0(%arg0: i32, %arg1: i32) -> (i32, i32) {
    %c0_i32 = arith.constant 0 : i32
    return %arg0, %arg1 : i32, i32
  }
  func.func @transform_1(%arg0: i32, %arg1: i32) -> (i32, i32) {
    %c0_i32 = arith.constant 0 : i32
    return %arg0, %arg1 : i32, i32
  }
}

</mosaic_0001>

<bundles_post_ra>
// kernel: tpu_custom_call.1
= control target key start
LH: loop header
LB: loop body
LE: loop exit
PB: predicated region body
PF: predicated region fallthrough
CT: control target
= control target key end

     0   :  { %6 = vsyncpa [#allocation4], 0  ;;  %s153_s0 = inlined_call_operand.hbm [shape: f32[2,128], index: 0, kind: input, shape index: {}]   ;;  %s154_s1 = inlined_call_operand.hbm [shape: f32[2,128], index: 1, kind: output, shape index: {}]  }
   0x1   :  { %7 = vsyncpa [#allocation5], 0  ;;  %s115_s6 = smov [#allocation3]   ;;  %s67_s10 = scalar_lea.hbm %s153_s0, 32 }
   0x2   :  { %s14_s7 = sshll.u32 %s115_s6, 4  ;;  %p68_p0 = scmp.ne.s32.totalorder %s153_s0, %s67_s10  ;;  %s15_s7 = int_to_ptr.vmem [resolvable:$true] %s14_s7 }
   0x3   :  { %p71_p1 = scmp.lt.u32.totalorder %s67_s10, %s153_s0 }
   0x5   :  { %p73_p2 = pnand %p71_p1, %p68_p0 }
   0x7   :  { %76 = shalt.err (!%p73_p2)
}
   0x8   :  { %s77_s15 = scalar_lea.vmem %s15_s7, 32  ;;  %p82_p4 = scmp.lt.s32.totalorder %s15_s7, %s15_s7 }
   0x9   :  { %p78_p3 = scmp.ne.s32.totalorder %s15_s7, %s77_s15  ;;  %p83_p5 = scmp.lt.s32.totalorder %s77_s15, %s77_s15 }
   0xb   :  { %p84_p6 = por %p83_p5, %p82_p4 }
   0xd   :  { %p85_p7 = pnand %p84_p6, %p78_p3 }
   0xf   :  { %88 = shalt.err (!%p85_p7)
}
  0x10   :  { %17 = dma.hbm_to_vmem [thread:$0]  %s153_s0, 32, %s15_s7, [#allocation4]  }
  0x11   :  { %111 = dma.done.wait [#allocation4], 32  }
  0x12   :  { %112 = vsyncadd [#allocation4], 4294967264  ;;  %v116_v0 = vmov 1   ;;  %v21_v1 = vld [vmem:[#allocation3] sm:$0x3]  ;;  %s117_s18 = smov 1   ;;  %v34_v2 = vlaneseq }
  0x13   :  { %66 = vset.pattern.permute.xlu0 %v116_v0  ;;  %s118_s19 = smov [#allocation6]  }
  0x14   :  { %39 = vperm.xlu0 %66, %v21_v1   ;;  %v35_v3 = vand.u32 127, %v34_v2  ;;  %s53_s20 = sshll.u32 %s118_s19, 4  ;;  %s54_s20 = int_to_ptr.vmem [resolvable:$true] %s53_s20 }
  0x15   :  { %s89_s0 = scalar_lea.vmem %s54_s20, 32  ;;  %p94_p9 = scmp.lt.s32.totalorder %s54_s20, %s54_s20 }
  0x16   :  { %vm36_vm0 = vcmp.eq.s32.totalorder %v35_v3, 0  ;;  %p90_p8 = scmp.ne.s32.totalorder %s54_s20, %s89_s0  ;;  %p95_p10 = scmp.lt.s32.totalorder %s89_s0, %s89_s0 }
  0x18   :  { %22 = vrot.lane.b32.xlu0 %v21_v1, %s117_s18  ;;  %p96_p11 = por %p95_p10, %p94_p9 }
  0x1a   :  { %p97_p12 = pnand %p96_p11, %p90_p8 }
  0x93   :  { %v40_v4 = vpop.permute.xlu0 %39 }
  0x97   :  { %v23_v5 = vpop.permute.xlu0 %22 }
  0x98   :  { %v42_v6 = vsel %vm36_vm0, %v40_v4, %v23_v5 }
  0x99   :  { %v43_v7 = vmul.f32 0.97, %v42_v6 }
  0x9b   :  { %v44_v8 = vsub.f32 %v21_v1, %v43_v7 }
  0x9d   :  { %45 = vst [vmem:[#allocation6] sm:$0x3] %v44_v8 }
  0x9e   :  { %100 = shalt.err (!%p97_p12)
}
  0x9f   :  { %s101_s23 = scalar_lea.hbm %s154_s1, 32 }
  0xa0   :  { %p102_p13 = scmp.ne.s32.totalorder %s154_s1, %s101_s23  ;;  %p105_p0 = scmp.lt.u32.totalorder %s101_s23, %s154_s1 }
  0xa2   :  { %p107_p1 = pnand %p105_p0, %p102_p13 }
  0xa4   :  { %110 = shalt.err (!%p107_p1)
}
  0xa5   :  { %56 = dma.vmem_to_hbm [thread:$0]  %s54_s20, 32, %s154_s1, [#allocation5]  }
  0xa6   :  { %113 = dma.done.wait [#allocation5], 32  }
  0xa7   :  { %114 = vsyncadd [#allocation5], 4294967264 }
  0xa8   :  { %60 = vsyncpa [#allocation4], 1 }
  0xa9   :  { %61 = vsyncpa [#allocation5], 1 }

</bundles_post_ra>
